<compile_context>
chip_gen: v7x
topology: tpu7x:2x2x1
jax: 0.10.0
libtpu: 0.0.40
codegen_flags: <defaults>
</compile_context>

<pallas_src>
import math
import numpy as np
import jax
import jax.numpy as jnp
from jax.experimental import pallas as pl
from jax.experimental.pallas import tpu as pltpu

EPS = 1e-5
LOG_EPS = float(math.log(EPS))   # ~= -11.5129
LANE = 128


def _round_up(n, m):
    return ((n + m - 1) // m) * m


def _cdiv(a, b):
    return (a + b - 1) // b


def anfis_kernel(x_ref, rep_ref, c_ref, a_ref, sel_ref, cons_ref,
                 crisp_ref, *maybe_fire_ref):
    # --- layer 1: Gaussian fuzzification, directly in log space ---
    x = x_ref[...]                                                      # (tb, I)
    # replicate each input across its M membership functions via one-hot matmul
    xr = jnp.dot(x, rep_ref[...], preferred_element_type=jnp.float32)   # (tb, IMp)
    d = xr - c_ref[...]
    v = -(d * d) * a_ref[...]                       # log-membership, <= 0 (a >= 0)
    v = jnp.where(jnp.isnan(v), LOG_EPS, v)         # nan_to_num(nan=eps) contract
    logf = jnp.clip(v, LOG_EPS, 0.0)                # == clamp(fz, EPS, 1) in log space

    # --- layer 2: rule firing strengths ---
    # product over selected antecedents == exp(sum of selected clipped logs)
    log_fire = jnp.dot(logf, sel_ref[...], preferred_element_type=jnp.float32)
    fire = jnp.exp(log_fire)                                            # (tb, R)
    if maybe_fire_ref:
        maybe_fire_ref[0][...] = fire

    # --- layers 3-5 folded: Mamdani aggregation + centroid via (R, 2) table ---
    # nd[:, 0] = sum_r fire * (sum_p cons*u)   (centroid numerator)
    # nd[:, 1] = sum_r fire * (sum_p cons)     (centroid denominator)
    nd = jnp.dot(fire, cons_ref[...], preferred_element_type=jnp.float32)  # (tb, 2)
    # exact divide (NOT approx reciprocal) to hold the 1e-4 crisp tolerance
    crisp_ref[...] = nd[:, 0:1] / (nd[:, 1:2] + EPS)


def mamdani_anfis_forward(x, centers, sigmas, antecedents, consequents,
                          out_centers, out_sigmas, output_range,
                          num_points=100, batch_tile=8192, return_firing=True):
    """Build dense rule tables host-side, run the Pallas kernel.

    batch_tile: upper bound on the per-grid-step batch tile.  The actual tile
    is chosen to give >= 2 grid steps when possible (v7x megacore) while
    dividing round_up(B, 8) as evenly as possible to minimize batch padding.
    Post-layout-fix the VMEM footprint is a few MiB even at 8192, which fits
    v5e's 16 MiB scoped default, v6e's 32 MiB and v7x's 64 MiB physical VMEM.
    """
    x = jnp.asarray(x, jnp.float32)
    B, I = x.shape
    centers = jnp.asarray(centers, jnp.float32)
    sigmas = jnp.asarray(sigmas, jnp.float32)
    M = centers.shape[1]
    ant_np = np.asarray(antecedents)
    cons_np_arr = np.asarray(consequents)
    R = int(ant_np.shape[0])
    K = int(np.asarray(out_centers).shape[0])
    IM = I * M
    IMp = _round_up(IM, LANE)

    # --- batch tiling: >= 2 grid steps when possible, minimal padding ---
    B8 = _round_up(B, 8)
    n_steps = max(2, _cdiv(B8, int(batch_tile)))
    tb = _round_up(_cdiv(B8, n_steps), 8)
    Bp = _round_up(B, tb)
    grid = (Bp // tb,)

    # per-batch input, lane-exact (Bp, I); only batch rows are padded
    x_pad = jnp.zeros((Bp, I), jnp.float32).at[:B, :].set(x)

    # replication one-hot: (x @ rep)[b, i*M+m] = x[b, i]
    im_input = np.arange(IM) // M
    im_mf = np.arange(IM) % M
    rep_np = np.zeros((I, IMp), np.float32)
    rep_np[im_input, np.arange(IM)] = 1.0
    rep = jnp.asarray(rep_np)

    # Gaussian input-MF params, flattened row-major (i*M+m), zero-padded lanes
    c_pad = jnp.zeros((1, IMp), jnp.float32).at[0, :IM].set(centers.reshape(IM))
    inv_2s2 = 1.0 / (2.0 * sigmas.reshape(IM) ** 2)
    a_pad = jnp.zeros((1, IMp), jnp.float32).at[0, :IM].set(inv_2s2)

    # one-hot antecedent selection: sel[i*M+m, r] = 1 iff antecedents[r, i] == m
    # (mf_idx == -1 "don't care" contributes no column entry; padded logf lanes
    # hit zero rows, so they cannot leak into any rule)
    sel_np = np.zeros((IMp, R), np.float32)
    sel_np[:IM, :] = (ant_np[:, im_input] == im_mf[None, :]).astype(np.float32).T
    sel = jnp.asarray(sel_np)

    # fold output-MF table + output universe + centroid sums into (R, 2):
    #   col 0 = sum_p out_mf[cons[r], p] * u[p],  col 1 = sum_p out_mf[cons[r], p]
    # invalid consequents are zero (skip branch in the reference forward).
    u = np.linspace(output_range[0], output_range[1], num_points).astype(np.float32)
    oc = np.asarray(out_centers, np.float32)
    osig = np.asarray(out_sigmas, np.float32)
    out_mf = np.exp(-((u[None, :] - oc[:, None]) ** 2) / (2.0 * osig[:, None] ** 2))
    valid = (cons_np_arr >= 0) & (cons_np_arr < K)
    idx = np.where(valid, cons_np_arr, 0)
    cons_tbl = np.where(valid[:, None], out_mf[idx], 0.0)          # (R, P)
    cons_nd_np = np.zeros((R, 2), np.float32)
    cons_nd_np[:, 0] = (cons_tbl * u[None, :]).sum(axis=1)
    cons_nd_np[:, 1] = cons_tbl.sum(axis=1)
    cons_nd = jnp.asarray(cons_nd_np)

    out_shape = [jax.ShapeDtypeStruct((Bp, 1), jnp.float32)]       # crisp column
    out_specs = [pl.BlockSpec((tb, 1), lambda b: (b, 0))]
    if return_firing:
        out_shape.append(jax.ShapeDtypeStruct((Bp, R), jnp.float32))  # lane-exact fire
        out_specs.append(pl.BlockSpec((tb, R), lambda b: (b, 0)))

    outs = pl.pallas_call(
        anfis_kernel,
        out_shape=tuple(out_shape),
        grid=grid,
        in_specs=[pl.BlockSpec((tb, I), lambda b: (b, 0)),      # x tile (streamed, lane-exact)
                  pl.BlockSpec((I, IMp), lambda b: (0, 0)),     # rep    (resident)
                  pl.BlockSpec((1, IMp), lambda b: (0, 0)),     # c      (resident)
                  pl.BlockSpec((1, IMp), lambda b: (0, 0)),     # 1/2s^2 (resident)
                  pl.BlockSpec((IMp, R), lambda b: (0, 0)),     # sel    (resident)
                  pl.BlockSpec((R, 2), lambda b: (0, 0))],      # cons   (resident)
        out_specs=tuple(out_specs),
        compiler_params=pltpu.CompilerParams(
            dimension_semantics=("parallel",)),
    )(x_pad, rep, c_pad, a_pad, sel, cons_nd)

    crisp = outs[0][:B, 0]                         # strip batch padding only
    if return_firing:
        return crisp, outs[1][:B]
    return crisp


def reference_forward(x, centers, sigmas, antecedents_np, consequents_np,
                      out_centers, out_sigmas, output_range, num_points=100):
    """Pure-JAX reference mirroring the PyTorch forward loop-for-loop."""
    B, I = x.shape
    K = out_centers.shape[0]
    fuzzy = []
    for i in range(I):
        v = x[:, i]
        fz = jnp.exp(-((v[None, :] - centers[i][:, None]) ** 2)
                     / (2.0 * sigmas[i][:, None] ** 2))           # (M, B)
        fz = jnp.clip(jnp.nan_to_num(fz, nan=EPS, posinf=1.0, neginf=0.0), EPS, 1.0)
        fuzzy.append(fz)
    R = antecedents_np.shape[0]
    firing = []
    for r in range(R):
        fs = jnp.ones((B,), jnp.float32)
        for i in range(I):
            m = int(antecedents_np[r, i])
            if m != -1:
                fs = fs * jnp.clip(fuzzy[i][m], EPS, 1.0)
        firing.append(fs)
    firing = jnp.stack(firing, axis=1)                            # (B, R)
    u = jnp.linspace(output_range[0], output_range[1], num_points)
    out_mf = jnp.exp(-((u[None, :] - out_centers[:, None]) ** 2)
                     / (2.0 * out_sigmas[:, None] ** 2))          # (K, P)
    impl = jnp.zeros((B, R, num_points), jnp.float32)
    for r in range(R):
        k = int(consequents_np[r])
        if k < 0 or k >= K:
            continue
        impl = impl.at[:, r].set(firing[:, r:r + 1] * out_mf[k][None, :])
    agg = impl.sum(axis=1)
    num = (u[None, :] * agg).sum(axis=1)
    den = agg.sum(axis=1) + EPS
    return num / den, firing


if __name__ == "__main__":
    # --- small deterministic problem (batch split over 2 grid steps) ---
    B, I, M, R, K = 64, 4, 4, 32, 5
    output_range = (0.0, 10.0)

    key = jax.random.PRNGKey(0)
    x = jax.random.uniform(key, (B, I), dtype=jnp.float32)                 # inputs in [0,1)

    # input Gaussian MF parameters: M evenly spaced centers per input
    centers = jnp.tile(jnp.linspace(0.0, 1.0, M)[None, :], (I, 1)).astype(jnp.float32)
    sigmas = jnp.full((I, M), 0.3, dtype=jnp.float32)

    # output Gaussian MF parameters
    out_centers = jnp.linspace(output_range[0], output_range[1], K).astype(jnp.float32)
    out_sigmas = jnp.full((K,), 1.5, dtype=jnp.float32)

    # deterministic rule base: antecedent MF index per input (-1 = "don't care"),
    # consequent output-MF index (-1 rows exercise the skip branch)
    ant_np = np.zeros((R, I), dtype=np.int32)
    for r in range(R):
        for i in range(I):
            ant_np[r, i] = (r // (M ** i)) % M
            if (r + i) % 7 == 0:
                ant_np[r, i] = -1
    cons_np = np.array([(r % (K + 1)) - 1 for r in range(R)], dtype=np.int32)

    crisp, firing = mamdani_anfis_forward(
        x, centers, sigmas, ant_np, cons_np,
        out_centers, out_sigmas, output_range, batch_tile=32, return_firing=True)
    crisp = jax.block_until_ready(crisp)
    firing = jax.block_until_ready(firing)

    # inference-only path (no firing-strength writeback)
    crisp_only = mamdani_anfis_forward(
        x, centers, sigmas, ant_np, cons_np,
        out_centers, out_sigmas, output_range, batch_tile=32, return_firing=False)
    crisp_only = jax.block_until_ready(crisp_only)

    # cross-check against a pure-JAX replica of the PyTorch loops
    ref_crisp, ref_firing = reference_forward(
        x, centers, sigmas, ant_np, cons_np,
        out_centers, out_sigmas, output_range)
    np.testing.assert_allclose(np.asarray(firing), np.asarray(ref_firing),
                               rtol=1e-4, atol=1e-5)
    np.testing.assert_allclose(np.asarray(crisp), np.asarray(ref_crisp),
                               rtol=1e-4, atol=1e-4)
    np.testing.assert_allclose(np.asarray(crisp_only), np.asarray(crisp),
                               rtol=1e-6, atol=1e-6)

    print("KERNEL_OK")
</pallas_src>

<mosaic_0001>
module attributes {stable_mosaic.version = 11 : i64} {
  func.func @anfis_kernel(%arg0: i32, %arg1: memref<32x4xf32, #tpu.memory_space<vmem>>, %arg2: memref<4x128xf32, #tpu.memory_space<vmem>>, %arg3: memref<1x128xf32, #tpu.memory_space<vmem>>, %arg4: memref<1x128xf32, #tpu.memory_space<vmem>>, %arg5: memref<128x32xf32, #tpu.memory_space<vmem>>, %arg6: memref<32x2xf32, #tpu.memory_space<vmem>>, %arg7: memref<32x1xf32, #tpu.memory_space<vmem>>, %arg8: memref<32x32xf32, #tpu.memory_space<vmem>>) attributes {dimension_semantics = [#tpu.dimension_semantics<parallel>], iteration_bounds = array<i64: 2>, scalar_prefetch = 0 : i64, scratch_operands = 0 : i64, tpu.core_type = #tpu.core_type<tc>, window_params = [{transform_indices = @transform_0, window_bounds = array<i64: 32, 4>}, {pipeline_mode = #tpu.pipeline_mode<synchronous>, transform_indices = @transform_1, window_bounds = array<i64: 4, 128>}, {pipeline_mode = #tpu.pipeline_mode<synchronous>, transform_indices = @transform_2, window_bounds = array<i64: 1, 128>}, {pipeline_mode = #tpu.pipeline_mode<synchronous>, transform_indices = @transform_3, window_bounds = array<i64: 1, 128>}, {pipeline_mode = #tpu.pipeline_mode<synchronous>, transform_indices = @transform_4, window_bounds = array<i64: 128, 32>}, {pipeline_mode = #tpu.pipeline_mode<synchronous>, transform_indices = @transform_5, window_bounds = array<i64: 32, 2>}, {transform_indices = @transform_6, window_bounds = array<i64: 32, 1>}, {transform_indices = @transform_7, window_bounds = array<i64: 32, 32>}]} {
    %c0 = arith.constant 0 : index
    %c0_0 = arith.constant 0 : index
    %0 = vector.load %arg1[%c0, %c0_0] : memref<32x4xf32, #tpu.memory_space<vmem>>, vector<32x4xf32>
    %c0_1 = arith.constant 0 : index
    %c0_2 = arith.constant 0 : index
    %1 = vector.load %arg2[%c0_1, %c0_2] : memref<4x128xf32, #tpu.memory_space<vmem>>, vector<4x128xf32>
    %cst = arith.constant dense<0.000000e+00> : vector<32x128xf32>
    %2 = tpu.matmul %0, %1, %cst {dimension_numbers = #tpu.dot_dimension_numbers<[1], [0], [0], [1], [0, 0, 1, 1], [], []>} : vector<32x4xf32>, vector<4x128xf32>, vector<32x128xf32> -> vector<32x128xf32>
    %c0_3 = arith.constant 0 : index
    %c0_4 = arith.constant 0 : index
    %3 = vector.load %arg3[%c0_3, %c0_4] : memref<1x128xf32, #tpu.memory_space<vmem>>, vector<1x128xf32>
    %4 = vector.broadcast %3 : vector<1x128xf32> to vector<32x128xf32>
    %5 = arith.subf %2, %4 : vector<32x128xf32>
    %6 = arith.mulf %5, %5 : vector<32x128xf32>
    %cst_5 = arith.constant 0.000000e+00 : f32
    %7 = vector.broadcast %cst_5 : f32 to vector<32x128xf32>
    %8 = arith.subf %7, %6 : vector<32x128xf32>
    %c0_6 = arith.constant 0 : index
    %c0_7 = arith.constant 0 : index
    %9 = vector.load %arg4[%c0_6, %c0_7] : memref<1x128xf32, #tpu.memory_space<vmem>>, vector<1x128xf32>
    %10 = vector.broadcast %9 : vector<1x128xf32> to vector<32x128xf32>
    %11 = arith.mulf %8, %10 : vector<32x128xf32>
    %12 = arith.cmpf one, %11, %11 : vector<32x128xf32>
    %cst_8 = arith.constant -11.5129251 : f32
    %13 = vector.broadcast %cst_8 : f32 to vector<32x128xf32>
    %14 = arith.select %12, %13, %11 : vector<32x128xi1>, vector<32x128xf32>
    %cst_9 = arith.constant -11.5129251 : f32
    %cst_10 = arith.constant 0.000000e+00 : f32
    %15 = vector.broadcast %cst_9 : f32 to vector<32x128xf32>
    %16 = arith.maximumf %15, %14 : vector<32x128xf32>
    %17 = vector.broadcast %cst_10 : f32 to vector<32x128xf32>
    %18 = arith.minimumf %17, %16 : vector<32x128xf32>
    %c0_11 = arith.constant 0 : index
    %c0_12 = arith.constant 0 : index
    %19 = vector.load %arg5[%c0_11, %c0_12] : memref<128x32xf32, #tpu.memory_space<vmem>>, vector<128x32xf32>
    %cst_13 = arith.constant dense<0.000000e+00> : vector<32x32xf32>
    %20 = tpu.matmul %18, %19, %cst_13 {dimension_numbers = #tpu.dot_dimension_numbers<[1], [0], [0], [1], [0, 0, 1, 1], [], []>} : vector<32x128xf32>, vector<128x32xf32>, vector<32x32xf32> -> vector<32x32xf32>
    %21 = math.exp %20 : vector<32x32xf32>
    %c0_14 = arith.constant 0 : index
    %c0_15 = arith.constant 0 : index
    %22 = vector.load %arg8[%c0_14, %c0_15] : memref<32x32xf32, #tpu.memory_space<vmem>>, vector<32x32xf32>
    tpu.vector_store %arg8[%c0_14, %c0_15], %21 {strides = array<i32>} : memref<32x32xf32, #tpu.memory_space<vmem>>, vector<32x32xf32>,
    %c0_16 = arith.constant 0 : index
    %c0_17 = arith.constant 0 : index
    %23 = vector.load %arg6[%c0_16, %c0_17] : memref<32x2xf32, #tpu.memory_space<vmem>>, vector<32x2xf32>
    %cst_18 = arith.constant dense<0.000000e+00> : vector<32x2xf32>
    %24 = tpu.matmul %21, %23, %cst_18 {dimension_numbers = #tpu.dot_dimension_numbers<[1], [0], [0], [1], [0, 0, 1, 1], [], []>} : vector<32x32xf32>, vector<32x2xf32>, vector<32x2xf32> -> vector<32x2xf32>
    %25 = vector.extract_strided_slice %24 {offsets = [0, 0], sizes = [32, 1], strides = [1, 1]} : vector<32x2xf32> to vector<32x1xf32>
    %26 = vector.extract_strided_slice %24 {offsets = [0, 1], sizes = [32, 1], strides = [1, 1]} : vector<32x2xf32> to vector<32x1xf32>
    %cst_19 = arith.constant 9.99999974E-6 : f32
    %27 = vector.broadcast %cst_19 : f32 to vector<32x1xf32>
    %28 = arith.addf %26, %27 : vector<32x1xf32>
    %29 = arith.divf %25, %28 : vector<32x1xf32>
    %c0_20 = arith.constant 0 : index
    %c0_21 = arith.constant 0 : index
    %30 = vector.load %arg7[%c0_20, %c0_21] : memref<32x1xf32, #tpu.memory_space<vmem>>, vector<32x1xf32>
    tpu.vector_store %arg7[%c0_20, %c0_21], %29 {strides = array<i32>} : memref<32x1xf32, #tpu.memory_space<vmem>>, vector<32x1xf32>,
    return
  }
  func.func @transform_0(%arg0: i32) -> (i32, i32) {
    %c0_i32 = arith.constant 0 : i32
    %c0_i32_0 = arith.constant 0 : i32
    return %arg0, %c0_i32 : i32, i32
  }
  func.func @transform_1(%arg0: i32) -> (i32, i32) {
    %c0_i32 = arith.constant 0 : i32
    %c0_i32_0 = arith.constant 0 : i32
    %c0_i32_1 = arith.constant 0 : i32
    return %c0_i32, %c0_i32_0 : i32, i32
  }
  func.func @transform_2(%arg0: i32) -> (i32, i32) {
    %c0_i32 = arith.constant 0 : i32
    %c0_i32_0 = arith.constant 0 : i32
    %c0_i32_1 = arith.constant 0 : i32
    return %c0_i32, %c0_i32_0 : i32, i32
  }
  func.func @transform_3(%arg0: i32) -> (i32, i32) {
    %c0_i32 = arith.constant 0 : i32
    %c0_i32_0 = arith.constant 0 : i32
    %c0_i32_1 = arith.constant 0 : i32
    return %c0_i32, %c0_i32_0 : i32, i32
  }
  func.func @transform_4(%arg0: i32) -> (i32, i32) {
    %c0_i32 = arith.constant 0 : i32
    %c0_i32_0 = arith.constant 0 : i32
    %c0_i32_1 = arith.constant 0 : i32
    return %c0_i32, %c0_i32_0 : i32, i32
  }
  func.func @transform_5(%arg0: i32) -> (i32, i32) {
    %c0_i32 = arith.constant 0 : i32
    %c0_i32_0 = arith.constant 0 : i32
    %c0_i32_1 = arith.constant 0 : i32
    return %c0_i32, %c0_i32_0 : i32, i32
  }
  func.func @transform_6(%arg0: i32) -> (i32, i32) {
    %c0_i32 = arith.constant 0 : i32
    %c0_i32_0 = arith.constant 0 : i32
    return %arg0, %c0_i32 : i32, i32
  }
  func.func @transform_7(%arg0: i32) -> (i32, i32) {
    %c0_i32 = arith.constant 0 : i32
    %c0_i32_0 = arith.constant 0 : i32
    return %arg0, %c0_i32 : i32, i32
  }
}

</mosaic_0001>

<bundles_post_ra>
// kernel: tpu_custom_call.1
= control target key start
LH: loop header
LB: loop body
LE: loop exit
PB: predicated region body
PF: predicated region fallthrough
CT: control target
= control target key end

     0   :  { %s1018_s24 = smov 0   ;;  %s1116_s0 = inlined_call_operand.vmem [shape: f32[64,4], index: 0, kind: input, shape index: {}]   ;;  %s1117_s1 = inlined_call_operand.vmem [shape: f32[4,128], index: 1, kind: input, shape index: {}]   ;;  %s1118_s2 = inlined_call_operand.vmem [shape: f32[1,128], index: 2, kind: input, shape index: {}]   ;;  %s1119_s3 = inlined_call_operand.vmem [shape: f32[1,128], index: 3, kind: input, shape index: {}]   ;;  %s1120_s4 = inlined_call_operand.vmem [shape: f32[128,32], index: 4, kind: input, shape index: {}]   ;;  %s1121_s5 = inlined_call_operand.vmem [shape: f32[32,2], index: 5, kind: input, shape index: {}]   ;;  %s1122_s6 = inlined_call_operand.vmem [shape: f32[64,1], index: 6, kind: output, shape index: {0}]   ;;  %s1123_s7 = inlined_call_operand.vmem [shape: f32[64,32], index: 7, kind: output, shape index: {1}]  }
   0x1 LB: > { %s787_s25 = sadd.s32 4294967295, %s975_s24   ;;  %p791_p0 = scmp.ge.s32.totalorder %s975_s24, 1  ;;  %s975_s24 = sphi %s1018_s24, %s18_s24  }
   0x2   : > { %p241_p1 = scmp.lt.s32.totalorder %s975_s24, 3 }
   0x4   : > { %p242_p2 = pnand %p791_p0, %p241_p1 }
   0x5   : > { %v300_v0 = vld [vmem:[%s1117_s1] sm:$0xf] (!%p242_p2)  ;;  %vm314_vm0 = vcmask (!%p242_p2), 1043456   ;;  %s792_s28 = sshll.u32 (!%p242_p2), %s787_s25, 2  ;;  %v450_v2 = vld [vmem:[%s1120_s4 + $0x8] sm:$0xff] (!%p242_p2)  ;;  %v451_v3 = vld [vmem:[%s1120_s4 + $0x10] sm:$0xff] (!%p242_p2) }
   0x6   : > { %245 = sbr.rel (%p242_p2) target bundleno = 825 (0x339), region = 44  ;;  %v449_v1 = vld [vmem:[%s1120_s4] sm:$0xff] (!%p242_p2)  ;;  %844 = vmatprep.subr.msk.mxu0 (!%p242_p2), %vm314_vm0, %v300_v0  ;;  %p279_p3 = scmp.lt.s32.totalorder (!%p242_p2), %s792_s28, 7  ;;  %v452_v4 = vld [vmem:[%s1120_s4 + $0x18] sm:$0xff] (!%p242_p2)  ;;  %v454_v8 = vld [vmem:[%s1120_s4 + $0x28] sm:$0xff] (!%p242_p2)  ;;  %vm301_vm1 = vcmask (!%p242_p2), 31744  }
   0x7   : > { %845 = vmatpush3.msk.msra.mxu0 (!%p242_p2), %vm314_vm0, %v300_v0  ;;  %v904_v5 = vpack.c.bf16 (!%p242_p2), %v450_v2, %v449_v1  ;;  %v908_v6 = vpack.c.bf16 (!%p242_p2), %v452_v4, %v451_v3  ;;  %v453_v7 = vld [vmem:[%s1120_s4 + $0x20] sm:$0xff] (!%p242_p2)  ;;  %v455_v10 = vld [vmem:[%s1120_s4 + $0x30] sm:$0xff] (!%p242_p2)  ;;  %v456_v11 = vld [vmem:[%s1120_s4 + $0x38] sm:$0xff] (!%p242_p2)  ;;  %vm558_vm6 = vcmask (!%p242_p2), 261120   ;;  %s977_s14 = smov (!%p242_p2), 127   ;;  %vm692_vm7 = vcmask (!%p242_p2), 7168  }
   0x8   : > { %v912_v9 = vpack.c.bf16 (!%p242_p2), %v454_v8, %v453_v7  ;;  %v916_v16 = vpack.c.bf16 (!%p242_p2), %v456_v11, %v455_v10  ;;  %v457_v17 = vld [vmem:[%s1120_s4 + $0x40] sm:$0xff] (!%p242_p2)  ;;  %v458_v18 = vld [vmem:[%s1120_s4 + $0x48] sm:$0xff] (!%p242_p2)  ;;  %v459_v20 = vld [vmem:[%s1120_s4 + $0x50] sm:$0xff] (!%p242_p2) }
   0x9   : > { %905 = vmatprep.subr.bf16.mxu1 (!%p242_p2), %v904_v5  ;;  %v920_v19 = vpack.c.bf16 (!%p242_p2), %v458_v18, %v457_v17  ;;  %v460_v21 = vld [vmem:[%s1120_s4 + $0x58] sm:$0xff] (!%p242_p2)  ;;  %v461_v23 = vld [vmem:[%s1120_s4 + $0x60] sm:$0xff] (!%p242_p2)  ;;  %v462_v24 = vld [vmem:[%s1120_s4 + $0x68] sm:$0xff] (!%p242_p2) }
   0xa   : > { %907 = vmatpush3.bf16.msra.mxu1 (!%p242_p2), %v904_v5  ;;  %v924_v22 = vpack.c.bf16 (!%p242_p2), %v460_v21, %v459_v20  ;;  %v928_v25 = vpack.c.bf16 (!%p242_p2), %v462_v24, %v461_v23  ;;  %v463_v26 = vld [vmem:[%s1120_s4 + $0x70] sm:$0xff] (!%p242_p2)  ;;  %v464_v27 = vld [vmem:[%s1120_s4 + $0x78] sm:$0xff] (!%p242_p2)  ;;  %v803_v29 = vld [vmem:[%s1118_s2] ss:$0 sm:$0xff] (!%p242_p2) }
   0xb   : > { %909 = vmatprep.subr.bf16.mxu1 (!%p242_p2), %v908_v6  ;;  %v932_v28 = vpack.c.bf16 (!%p242_p2), %v464_v27, %v463_v26  ;;  %v804_v35 = vld [vmem:[%s1119_s3] ss:$0 sm:$0xff] (!%p242_p2)  ;;  %v564_v0 = vld [vmem:[%s1121_s5 + $0x8] sm:$0xff] (!%p242_p2)  ;;  %v565_v2 = vld [vmem:[%s1121_s5 + $0x10] sm:$0xff] (!%p242_p2) }
   0xc   : > { %v563_v63 = vld [vmem:[%s1121_s5] sm:$0xff] (!%p242_p2)  ;;  %v566_v3 = vld [vmem:[%s1121_s5 + $0x18] sm:$0xff] (!%p242_p2) }
   0xd   : > { %s1125_s28 = smov (!%p279_p3, %s792_s28), 7  ;;  %v936_v1 = vpack.c.bf16 %v564_v0, %v563_v63  ;;  %v940_v4 = vpack.c.bf16 %v566_v3, %v565_v2 }
   0xe   : > { %s1047_s18 = sshll.u32 %s1125_s28, 3  ;;  %911 = vmatpush3.bf16.msra.mxu1 %v908_v6 }
   0xf   : > { %s282_s21 = scalar_lea.vmem %s1116_s0, %s1047_s18  ;;  %913 = vmatprep.subr.bf16.mxu1 %v912_v9  ;;  %937 = vmatprep.subr.bf16.mxu0 %v936_v1  ;;  %s294_s13 = scalar_lea.vmem %s1123_s7, %s1047_s18 }
  0x10   : > { %v296_v12 = vld [vmem:[%s282_s21] sm:$0xff]  ;;  %v297_v13 = vld [vmem:[%s282_s21 + $0x8] sm:$0xff]  ;;  %v298_v14 = vld [vmem:[%s282_s21 + $0x10] sm:$0xff]  ;;  %s288_s17 = scalar_lea.vmem %s1122_s6, %s1047_s18 }
  0x11   : > { %846 = vmatprep.mubr.msk.f32.mxu0 %vm301_vm1, %v296_v12  ;;  %v299_v15 = vld [vmem:[%s282_s21 + $0x18] sm:$0xff] }
  0x12   : > { %847 = vmatmul.mubr.msk.f32.vlgmr.msra.gmra.mrb[0].mxu0 %vm301_vm1, %v297_v13  ;;  %915 = vmatpush3.bf16.msra.mxu1 %v912_v9 }
  0x13   : > { %849 = vmatprep.mubr.msk.f32.mxu0 %vm301_vm1, %v298_v14  ;;  %917 = vmatprep.subr.bf16.mxu1 %v916_v16 }
  0x14   : > { %939 = vmatpush3.bf16.msra.mxu0 %v936_v1 }
  0x15   : > { %941 = vmatprep.subr.bf16.mxu0 %v940_v4 }
  0x16   : > { %850 = vmatmul.mubr.msk.f32.gmra.mrb[2].mxu0 %vm301_vm1, %v299_v15  ;;  %919 = vmatpush3.bf16.msra.mxu1 %v916_v16 }
  0x17   : > { %921 = vmatprep.subr.bf16.mxu1 %v920_v19 }
  0x18   : > { %943 = vmatpush3.bf16.msra.mxu0 %v940_v4 }
  0x1a   : > { %923 = vmatpush3.bf16.msra.mxu1 %v920_v19 }
  0x1b   : > { %925 = vmatprep.subr.bf16.mxu1 %v924_v22 }
  0x1e   : > { %927 = vmatpush3.bf16.msra.mxu1 %v924_v22 }
  0x1f   : > { %929 = vmatprep.subr.bf16.mxu1 %v928_v25 }
  0x22   : > { %931 = vmatpush3.bf16.msra.mxu1 %v928_v25 }
  0x23   : > { %933 = vmatprep.subr.bf16.mxu1 %v932_v28 }
  0x26   : > { %935 = vmatpush3.bf16.msra.mxu1 %v932_v28 }
  0xe5   : > { %v848_v30 = vpop.f32.mrb[0].mxu0 }
  0xe6   : > { %v411_v31 = vsub.f32 %v848_v30, %v803_v29  ;;  %v384_v32 = vpop.f32.mrb[1].mxu0 }
  0xe7   : > { %v410_v33 = vsub.f32 %v384_v32, %v803_v29 }
  0xe8   : > { %v415_v34 = vmul.f32 %v411_v31, %v411_v31 }
  0xe9   : > { %v414_v36 = vmul.f32 %v410_v33, %v410_v33  ;;  %v851_v37 = vpop.f32.mrb[2].mxu0 }
  0xea   : > { %v419_v38 = vsub.f32 0.0, %v415_v34  ;;  %v413_v39 = vsub.f32 %v851_v37, %v803_v29  ;;  %v394_v40 = vpop.f32.mrb[3].mxu0 }
  0xeb   : > { %v418_v41 = vsub.f32 0.0, %v414_v36  ;;  %v412_v42 = vsub.f32 %v394_v40, %v803_v29 }
  0xec   : > { %v430_v43 = vmul.f32 %v804_v35, %v419_v38  ;;  %v417_v44 = vmul.f32 %v413_v39, %v413_v39 }
  0xed   : > { %v416_v45 = vmul.f32 %v412_v42, %v412_v42  ;;  %v429_v46 = vmul.f32 %v804_v35, %v418_v41 }
  0xee   : > { %vm434_vm2 = vcmp.ne.f32.partialorder %v430_v43, %v430_v43  ;;  %v421_v47 = vsub.f32 0.0, %v417_v44 }
  0xef   : > { %v420_v48 = vsub.f32 0.0, %v416_v45  ;;  %vm433_vm3 = vcmp.ne.f32.partialorder %v429_v46, %v429_v46  ;;  %v438_v49 = vsel %vm434_vm2, -11.512925, %v430_v43 }
  0xf0   : > { %v432_v50 = vmul.f32 %v804_v35, %v421_v47  ;;  %v437_v51 = vsel %vm433_vm3, -11.512925, %v429_v46  ;;  %v442_v52 = vmax.f32 %v438_v49, -11.512925 }
  0xf1   : > { %v431_v53 = vmul.f32 %v804_v35, %v420_v48  ;;  %v441_v54 = vmax.f32 %v437_v51, -11.512925 }
  0xf2   : > { %vm436_vm4 = vcmp.ne.f32.partialorder %v432_v50, %v432_v50  ;;  %v446_v57 = vmin.f32 %v442_v52, 0.0 }
  0xf3   : > { %vm435_vm5 = vcmp.ne.f32.partialorder %v431_v53, %v431_v53  ;;  %v445_v55 = vmin.f32 %v441_v54, 0.0  ;;  %v440_v56 = vsel %vm436_vm4, -11.512925, %v432_v50 }
  0xf4   : > { %v439_v58 = vsel %vm435_vm5, -11.512925, %v431_v53  ;;  %v444_v59 = vmax.f32 %v440_v56, -11.512925 }
  0xf5   : > { %884 = vmatprep.mubr.f32.mxu1 %v445_v55  ;;  %v443_v60 = vmax.f32 %v439_v58, -11.512925 }
  0xf6   : > { %885 = vmatmul.mubr.f32.vlgmr.msra.gmra.mrb[0].mxu1 %v446_v57  ;;  %v448_v62 = vmin.f32 %v444_v59, 0.0 }
  0xf7   : > { %v447_v61 = vmin.f32 %v443_v60, 0.0 }
  0xf9   : > { %887 = vmatprep.mubr.f32.mxu1 %v447_v61 }
  0xfa   : > { %888 = vmatmul.mubr.f32.gmra.mrb[2].mxu1 %v448_v62 }
 0x1c9   : > { %v886_v5 = vpop.f32.mrb[0].mxu1 }
 0x1ca   : > { %v552_v6 = vmul.f32 1.442695, %v886_v5  ;;  %v531_v7 = vpop.f32.mrb[1].mxu1 }
 0x1cb   : > { %v550_v8 = vmul.f32 1.442695, %v531_v7 }
 0x1cd   : > { %953 = vpow2.f32 %v550_v8  ;;  %v889_v9 = vpop.f32.mrb[2].mxu1 }
 0x1ce   : > { %955 = vpow2.f32 %v552_v6  ;;  %v556_v10 = vmul.f32 1.442695, %v889_v9  ;;  %v541_v11 = vpop.f32.mrb[3].mxu1 }
 0x1cf   : > { %v554_v12 = vmul.f32 1.442695, %v541_v11 }
 0x1d1   : > { %957 = vpow2.f32 %v554_v12 }
 0x1d2   : > { %959 = vpow2.f32 %v556_v10 }
 0x1d7   : > { %v954_v13 = vpop.eup %953 }
 0x1d8   : > { %v956_v14 = vpop.eup %955  ;;  %559 = vst.msk [vmem:[%s294_s13] sm:$0xff] %vm558_vm6, %v954_v13  ;;  %898 = vmatprep.mubr.msk.f32.mxu0 %vm558_vm6, %v954_v13 }
 0x1d9   : > { %560 = vst.msk [vmem:[%s294_s13 + $0x8] sm:$0xff] %vm558_vm6, %v956_v14  ;;  %899 = vmatmul.mubr.msk.f32.vlgmr.msra.gmra.mrb[4].mxu0 %vm558_vm6, %v956_v14 }
 0x1db   : > { %v958_v15 = vpop.eup %957 }
 0x1dc   : > { %v960_v16 = vpop.eup %959  ;;  %561 = vst.msk [vmem:[%s294_s13 + $0x10] sm:$0xff] %vm558_vm6, %v958_v15  ;;  %901 = vmatprep.mubr.msk.f32.mxu0 %vm558_vm6, %v958_v15 }
 0x1dd   : > { %562 = vst.msk [vmem:[%s294_s13 + $0x18] sm:$0xff] %vm558_vm6, %v960_v16  ;;  %902 = vmatmul.mubr.msk.f32.gmra.mrb[6].mxu0 %vm558_vm6, %v960_v16 }
 0x2ac   : > { %v900_v17 = vpop.f32.mrb[4].mxu0 }
 0x2ad   : > { %v645_v18 = vpop.f32.mrb[5].mxu0  ;;  %v665_v22 = vadd.f32 1e-05, %v900_v17 }
 0x2ae   : > { %v664_v19 = vadd.f32 1e-05, %v645_v18 }
 0x2b0   : > { %672 = vrot.lane.b32.xlu0 %v664_v19, %s977_s14  ;;  %v903_v20 = vpop.f32.mrb[6].mxu0 }
 0x2b1   : > { %v655_v21 = vpop.f32.mrb[7].mxu0  ;;  %v667_v24 = vadd.f32 1e-05, %v903_v20 }
 0x2b2   : > { %v666_v23 = vadd.f32 1e-05, %v655_v21 }
 0x2b4   : > { %674 = vrot.lane.b32.xlu0 %v665_v22, %s977_s14  ;;  %676 = vrot.lane.b32.xlu1 %v666_v23, %s977_s14 }
 0x2b8   : > { %678 = vrot.lane.b32.xlu1 %v667_v24, %s977_s14 }
 0x322   : > { %v673_v25 = vpop.permute.xlu0 %672 }
 0x323   : > { %961 = vrcp.f32 %v673_v25 }
 0x326   : > { %v675_v26 = vpop.permute.xlu0 %674  ;;  %v677_v27 = vpop.permute.xlu1 %676 }
 0x327   : > { %963 = vrcp.f32 %v675_v26 }
 0x328   : > { %965 = vrcp.f32 %v677_v27 }
 0x32a   : > { %v679_v28 = vpop.permute.xlu1 %678 }
 0x32b   : > { %967 = vrcp.f32 %v679_v28 }
 0x32d   : > { %v962_v29 = vpop.eup %961 }
 0x32e   : > { %v685_v30 = vmul.f32 %v962_v29, %v645_v18 }
 0x330   : > { %693 = vst.msk [vmem:[%s288_s17] sm:$0xff] %vm692_vm7, %v685_v30 }
 0x331   : > { %v964_v31 = vpop.eup %963 }
 0x332   : > { %v966_v32 = vpop.eup %965  ;;  %v687_v33 = vmul.f32 %v964_v31, %v900_v17 }
 0x333   : > { %v689_v34 = vmul.f32 %v966_v32, %v655_v21 }
 0x334   : > { %694 = vst.msk [vmem:[%s288_s17 + $0x8] sm:$0xff] %vm692_vm7, %v687_v33 }
 0x335   : > { %v968_v35 = vpop.eup %967  ;;  %695 = vst.msk [vmem:[%s288_s17 + $0x10] sm:$0xff] %vm692_vm7, %v689_v34 }
 0x336   : > { %v691_v36 = vmul.f32 %v968_v35, %v903_v20 }
 0x338   : > { %696 = vst.msk [vmem:[%s288_s17 + $0x18] sm:$0xff] %vm692_vm7, %v691_v36 }
 0x339 PF: > { %s18_s24 = sadd.s32 1, %s975_s24  }
 0x33a   : > { %p15_p4 = scmp.ge.s32.totalorder %s18_s24, 4  }
 0x33c   :  { %17 = sbr.rel (!%p15_p4) target bundleno = 1 (0x1), region = 86 }

</bundles_post_ra>
